<compile_context>
chip_gen: v7x
topology: tpu7x:2x2x1
jax: 0.10.0
libtpu: 0.0.40
codegen_flags: <defaults>
</compile_context>

<pallas_src>
import jax
import jax.numpy as jnp
from jax.experimental import pallas as pl
from jax.experimental.pallas import tpu as pltpu


def _round_up(n: int, m: int) -> int:
    return ((n + m - 1) // m) * m


def _dqn_mlp_kernel(x_ref, w1_ref, b1_ref, w2_ref, b2_ref, w3_ref, b3_ref, out_ref):
    # One (tb, F) bf16 row tile per grid step; bf16 weights are resident in
    # VMEM across steps.  Matmuls hit the MXU with f32 accumulation; bias adds
    # and ReLUs run on the VPU in f32 (v5e has no bf16 VPU).
    h1 = jnp.dot(x_ref[...], w1_ref[...], preferred_element_type=jnp.float32)
    h1 = jnp.maximum(h1 + b1_ref[...], 0.0)

    h2 = jnp.dot(h1.astype(jnp.bfloat16), w2_ref[...],
                 preferred_element_type=jnp.float32)
    h2 = jnp.maximum(h2 + b2_ref[...], 0.0)

    q = jnp.dot(h2.astype(jnp.bfloat16), w3_ref[...],
                preferred_element_type=jnp.float32) + b3_ref[...]
    out_ref[...] = q.astype(out_ref.dtype)


def init_params(key, flat_input_size, action_size):
    """PyTorch nn.Linear default init: U[-1/sqrt(fan_in), 1/sqrt(fan_in)] (f32, unpadded)."""
    dims = [(flat_input_size, 256), (256, 128), (128, action_size)]
    params = {}
    for i, (fan_in, fan_out) in enumerate(dims, start=1):
        key, kw, kb = jax.random.split(key, 3)
        bound = 1.0 / jnp.sqrt(jnp.float32(fan_in))
        params[f"w{i}"] = jax.random.uniform(
            kw, (fan_in, fan_out), jnp.float32, -bound, bound)
        params[f"b{i}"] = jax.random.uniform(
            kb, (1, fan_out), jnp.float32, -bound, bound)
    return params


def pack_params(params, action_size):
    """One-time offline prep.

    * w1 stays unpadded on its input dim (F=59) — x is streamed unpadded.
    * w3 / b3 are zero-padded on the output dim to 128 lanes: lane-dense,
      unmasked stores; padded columns produce zeros that are sliced off later,
      so the math is identical to the unpadded f32 model up to bf16 rounding.
    * Weights in bf16 (halves resident weight footprint, native MXU width);
      biases stay f32 (added to the f32 accumulator).
    """
    a_pad = _round_up(action_size, 128)
    h2 = params["w3"].shape[0]

    w3 = jnp.zeros((h2, a_pad), jnp.float32).at[:, :action_size].set(params["w3"])
    b3 = jnp.zeros((1, a_pad), jnp.float32).at[:, :action_size].set(params["b3"])

    return {
        "w1": params["w1"].astype(jnp.bfloat16),
        "b1": params["b1"].astype(jnp.float32),
        "w2": params["w2"].astype(jnp.bfloat16),
        "b2": params["b2"].astype(jnp.float32),
        "w3": w3.astype(jnp.bfloat16),
        "b3": b3,
    }


def dqn_forward(x, packed, action_size, *, tile_b=2048, slice_output=True):
    """x: (B, flat_input) f32 or bf16.  packed: output of pack_params.

    Returns (B, action_size) f32 Q-values (or the padded (Bp, 128) block if
    slice_output=False, letting the caller slice lazily).
    """
    B, F = x.shape
    F_w, H1 = packed["w1"].shape
    H2 = packed["w2"].shape[1]
    A_pad = packed["w3"].shape[1]
    assert F == F_w, "feature dim mismatch with packed weights"

    # x is the only streamed input — keep it bf16. (Best: callers pass bf16
    # activations so this cast is a no-op and adds no HBM pass.)
    if x.dtype != jnp.bfloat16:
        x = x.astype(jnp.bfloat16)

    # Row tile: split B into ceil(B/tile_b) near-equal tiles, each a multiple
    # of 8 sublanes, so batch padding is < 8 rows per tile (never a full tile).
    n_tiles = max(1, -(-B // tile_b))
    tb = max(8, _round_up(-(-B // n_tiles), 8))
    Bp = tb * n_tiles
    if Bp != B:
        x = jnp.pad(x, ((0, Bp - B), (0, 0)))

    grid = (n_tiles,)

    out = pl.pallas_call(
        _dqn_mlp_kernel,
        out_shape=jax.ShapeDtypeStruct((Bp, A_pad), jnp.float32),
        grid=grid,
        in_specs=[
            # x: tiled over batch, unpadded feature dim (59 == full array dim),
            # auto double-buffered.  If xprof shows exposed input DMA, add
            # pipeline_mode=pl.Buffered(3) here only.
            pl.BlockSpec((tb, F), lambda i: (i, 0)),
            pl.BlockSpec((F, H1), lambda i: (0, 0)),      # w1: resident
            pl.BlockSpec((1, H1), lambda i: (0, 0)),      # b1: resident
            pl.BlockSpec((H1, H2), lambda i: (0, 0)),     # w2: resident
            pl.BlockSpec((1, H2), lambda i: (0, 0)),      # b2: resident
            pl.BlockSpec((H2, A_pad), lambda i: (0, 0)),  # w3: resident
            pl.BlockSpec((1, A_pad), lambda i: (0, 0)),   # b3: resident
        ],
        out_specs=pl.BlockSpec((tb, A_pad), lambda i: (i, 0)),
        compiler_params=pltpu.CompilerParams(
            # On v7x, if a trace shows only one active TC, switch this axis to
            # pltpu.CORE_PARALLEL for explicit 2-TC sharding.
            dimension_semantics=("parallel",),
            vmem_limit_bytes=32 * 1024 * 1024,
        ),
    )(x, packed["w1"], packed["b1"], packed["w2"],
      packed["b2"], packed["w3"], packed["b3"])

    if slice_output:
        return out[:B, :action_size]
    return out


# ----------------------------- references ---------------------------------

def reference_forward_f32(x, params):
    h1 = jnp.maximum(x @ params["w1"] + params["b1"], 0.0)
    h2 = jnp.maximum(h1 @ params["w2"] + params["b2"], 0.0)
    return h2 @ params["w3"] + params["b3"]


def reference_forward_bf16(x, params):
    """Matches the kernel's numerics: bf16 dot inputs, f32 accumulation / bias / ReLU."""
    def mm(a, w):
        return jnp.dot(a.astype(jnp.bfloat16), w.astype(jnp.bfloat16),
                       preferred_element_type=jnp.float32)
    h1 = jnp.maximum(mm(x, params["w1"]) + params["b1"], 0.0)
    h2 = jnp.maximum(mm(h1, params["w2"]) + params["b2"], 0.0)
    return mm(h2, params["w3"]) + params["b3"]


if __name__ == "__main__":
    # Quoridor with board_size=5:
    #   board_input_size = 25, walls_input_size = 4*4*2 = 32, +2 scalars -> 59
    board_size = 5
    action_size = 57  # 25 move actions + 32 wall actions
    flat_input_size = board_size * board_size + (board_size - 1) ** 2 * 2 + 2

    key = jax.random.PRNGKey(0)
    key, kx = jax.random.split(key)
    batch = 2  # debug-sized; kernel tiles/pads and scales to large replay batches
    x = jax.random.normal(kx, (batch, flat_input_size), jnp.float32)

    params = init_params(key, flat_input_size, action_size)
    packed = pack_params(params, action_size)

    q = dqn_forward(x, packed, action_size)
    q = jax.block_until_ready(q)
    assert q.shape == (batch, action_size)

    # Tight check vs. a bf16-matched reference (same numerics as the kernel:
    # bf16 x, bf16 weights, f32 accumulation).
    q_ref_bf16 = reference_forward_bf16(x, params)
    assert jnp.allclose(q, q_ref_bf16, atol=2e-3, rtol=2e-3), "mismatch vs bf16-matched reference"

    # Loose sanity check vs. the pure-f32 PyTorch-equivalent math.
    q_ref_f32 = reference_forward_f32(x, params)
    assert jnp.allclose(q, q_ref_f32, atol=1e-1, rtol=5e-2), "mismatch vs f32 reference"

    print("KERNEL_OK")
</pallas_src>

<mosaic_0001>
module attributes {stable_mosaic.version = 11 : i64} {
  func.func @_dqn_mlp_kernel(%arg0: i32, %arg1: memref<8x59xbf16, #tpu.memory_space<vmem>>, %arg2: memref<59x256xbf16, #tpu.memory_space<vmem>>, %arg3: memref<1x256xf32, #tpu.memory_space<vmem>>, %arg4: memref<256x128xbf16, #tpu.memory_space<vmem>>, %arg5: memref<1x128xf32, #tpu.memory_space<vmem>>, %arg6: memref<128x128xbf16, #tpu.memory_space<vmem>>, %arg7: memref<1x128xf32, #tpu.memory_space<vmem>>, %arg8: memref<8x128xf32, #tpu.memory_space<vmem>>) attributes {dimension_semantics = [#tpu.dimension_semantics<parallel>], iteration_bounds = array<i64: 1>, scalar_prefetch = 0 : i64, scratch_operands = 0 : i64, tpu.core_type = #tpu.core_type<tc>, window_params = [{transform_indices = @transform_0, window_bounds = array<i64: 8, 59>}, {pipeline_mode = #tpu.pipeline_mode<synchronous>, transform_indices = @transform_1, window_bounds = array<i64: 59, 256>}, {pipeline_mode = #tpu.pipeline_mode<synchronous>, transform_indices = @transform_2, window_bounds = array<i64: 1, 256>}, {pipeline_mode = #tpu.pipeline_mode<synchronous>, transform_indices = @transform_3, window_bounds = array<i64: 256, 128>}, {pipeline_mode = #tpu.pipeline_mode<synchronous>, transform_indices = @transform_4, window_bounds = array<i64: 1, 128>}, {pipeline_mode = #tpu.pipeline_mode<synchronous>, transform_indices = @transform_5, window_bounds = array<i64: 128, 128>}, {pipeline_mode = #tpu.pipeline_mode<synchronous>, transform_indices = @transform_6, window_bounds = array<i64: 1, 128>}, {transform_indices = @transform_7, window_bounds = array<i64: 8, 128>}]} {
    %c0 = arith.constant 0 : index
    %c0_0 = arith.constant 0 : index
    %0 = vector.load %arg1[%c0, %c0_0] : memref<8x59xbf16, #tpu.memory_space<vmem>>, vector<8x59xbf16>
    %c0_1 = arith.constant 0 : index
    %c0_2 = arith.constant 0 : index
    %1 = vector.load %arg2[%c0_1, %c0_2] : memref<59x256xbf16, #tpu.memory_space<vmem>>, vector<59x256xbf16>
    %cst = arith.constant dense<0.000000e+00> : vector<8x256xf32>
    %2 = tpu.matmul %0, %1, %cst {dimension_numbers = #tpu.dot_dimension_numbers<[1], [0], [0], [1], [0, 0, 1, 1], [], []>} : vector<8x59xbf16>, vector<59x256xbf16>, vector<8x256xf32> -> vector<8x256xf32>
    %c0_3 = arith.constant 0 : index
    %c0_4 = arith.constant 0 : index
    %3 = vector.load %arg3[%c0_3, %c0_4] : memref<1x256xf32, #tpu.memory_space<vmem>>, vector<1x256xf32>
    %4 = vector.broadcast %3 : vector<1x256xf32> to vector<8x256xf32>
    %5 = arith.addf %2, %4 : vector<8x256xf32>
    %cst_5 = arith.constant 0.000000e+00 : f32
    %6 = vector.broadcast %cst_5 : f32 to vector<8x256xf32>
    %7 = arith.maximumf %5, %6 : vector<8x256xf32>
    %8 = arith.truncf %7 : vector<8x256xf32> to vector<8x256xbf16>
    %c0_6 = arith.constant 0 : index
    %c0_7 = arith.constant 0 : index
    %9 = vector.load %arg4[%c0_6, %c0_7] : memref<256x128xbf16, #tpu.memory_space<vmem>>, vector<256x128xbf16>
    %cst_8 = arith.constant dense<0.000000e+00> : vector<8x128xf32>
    %10 = tpu.matmul %8, %9, %cst_8 {dimension_numbers = #tpu.dot_dimension_numbers<[1], [0], [0], [1], [0, 0, 1, 1], [], []>} : vector<8x256xbf16>, vector<256x128xbf16>, vector<8x128xf32> -> vector<8x128xf32>
    %c0_9 = arith.constant 0 : index
    %c0_10 = arith.constant 0 : index
    %11 = vector.load %arg5[%c0_9, %c0_10] : memref<1x128xf32, #tpu.memory_space<vmem>>, vector<1x128xf32>
    %12 = vector.broadcast %11 : vector<1x128xf32> to vector<8x128xf32>
    %13 = arith.addf %10, %12 : vector<8x128xf32>
    %cst_11 = arith.constant 0.000000e+00 : f32
    %14 = vector.broadcast %cst_11 : f32 to vector<8x128xf32>
    %15 = arith.maximumf %13, %14 : vector<8x128xf32>
    %16 = arith.truncf %15 : vector<8x128xf32> to vector<8x128xbf16>
    %c0_12 = arith.constant 0 : index
    %c0_13 = arith.constant 0 : index
    %17 = vector.load %arg6[%c0_12, %c0_13] : memref<128x128xbf16, #tpu.memory_space<vmem>>, vector<128x128xbf16>
    %cst_14 = arith.constant dense<0.000000e+00> : vector<8x128xf32>
    %18 = tpu.matmul %16, %17, %cst_14 {dimension_numbers = #tpu.dot_dimension_numbers<[1], [0], [0], [1], [0, 0, 1, 1], [], []>} : vector<8x128xbf16>, vector<128x128xbf16>, vector<8x128xf32> -> vector<8x128xf32>
    %c0_15 = arith.constant 0 : index
    %c0_16 = arith.constant 0 : index
    %19 = vector.load %arg7[%c0_15, %c0_16] : memref<1x128xf32, #tpu.memory_space<vmem>>, vector<1x128xf32>
    %20 = vector.broadcast %19 : vector<1x128xf32> to vector<8x128xf32>
    %21 = arith.addf %18, %20 : vector<8x128xf32>
    %c0_17 = arith.constant 0 : index
    %c0_18 = arith.constant 0 : index
    %22 = vector.load %arg8[%c0_17, %c0_18] : memref<8x128xf32, #tpu.memory_space<vmem>>, vector<8x128xf32>
    tpu.vector_store %arg8[%c0_17, %c0_18], %21 {strides = array<i32>} : memref<8x128xf32, #tpu.memory_space<vmem>>, vector<8x128xf32>,
    return
  }
  func.func @transform_0(%arg0: i32) -> (i32, i32) {
    %c0_i32 = arith.constant 0 : i32
    %c0_i32_0 = arith.constant 0 : i32
    return %arg0, %c0_i32 : i32, i32
  }
  func.func @transform_1(%arg0: i32) -> (i32, i32) {
    %c0_i32 = arith.constant 0 : i32
    %c0_i32_0 = arith.constant 0 : i32
    %c0_i32_1 = arith.constant 0 : i32
    return %c0_i32, %c0_i32_0 : i32, i32
  }
  func.func @transform_2(%arg0: i32) -> (i32, i32) {
    %c0_i32 = arith.constant 0 : i32
    %c0_i32_0 = arith.constant 0 : i32
    %c0_i32_1 = arith.constant 0 : i32
    return %c0_i32, %c0_i32_0 : i32, i32
  }
  func.func @transform_3(%arg0: i32) -> (i32, i32) {
    %c0_i32 = arith.constant 0 : i32
    %c0_i32_0 = arith.constant 0 : i32
    %c0_i32_1 = arith.constant 0 : i32
    return %c0_i32, %c0_i32_0 : i32, i32
  }
  func.func @transform_4(%arg0: i32) -> (i32, i32) {
    %c0_i32 = arith.constant 0 : i32
    %c0_i32_0 = arith.constant 0 : i32
    %c0_i32_1 = arith.constant 0 : i32
    return %c0_i32, %c0_i32_0 : i32, i32
  }
  func.func @transform_5(%arg0: i32) -> (i32, i32) {
    %c0_i32 = arith.constant 0 : i32
    %c0_i32_0 = arith.constant 0 : i32
    %c0_i32_1 = arith.constant 0 : i32
    return %c0_i32, %c0_i32_0 : i32, i32
  }
  func.func @transform_6(%arg0: i32) -> (i32, i32) {
    %c0_i32 = arith.constant 0 : i32
    %c0_i32_0 = arith.constant 0 : i32
    %c0_i32_1 = arith.constant 0 : i32
    return %c0_i32, %c0_i32_0 : i32, i32
  }
  func.func @transform_7(%arg0: i32) -> (i32, i32) {
    %c0_i32 = arith.constant 0 : i32
    %c0_i32_0 = arith.constant 0 : i32
    return %arg0, %c0_i32 : i32, i32
  }
}

</mosaic_0001>

<bundles_post_ra>
// kernel: tpu_custom_call.1
= control target key start
LH: loop header
LB: loop body
LE: loop exit
PB: predicated region body
PF: predicated region fallthrough
CT: control target
= control target key end

     0   :  { %12 = vsyncpa [#allocation3], 0  ;;  %s880_s0 = inlined_call_operand.hbm [shape: bf16[8,59], index: 0, kind: input, shape index: {}]   ;;  %s881_s1 = inlined_call_operand.hbm [shape: bf16[59,256], index: 1, kind: input, shape index: {}]   ;;  %s882_s2 = inlined_call_operand.vmem [shape: f32[1,256], index: 2, kind: input, shape index: {}]   ;;  %s883_s3 = inlined_call_operand.hbm [shape: bf16[256,128], index: 3, kind: input, shape index: {}]   ;;  %s884_s4 = inlined_call_operand.vmem [shape: f32[1,128], index: 4, kind: input, shape index: {}]   ;;  %s885_s5 = inlined_call_operand.hbm [shape: bf16[128,128], index: 5, kind: input, shape index: {}]   ;;  %s886_s6 = inlined_call_operand.vmem [shape: f32[1,128], index: 6, kind: input, shape index: {}]   ;;  %s887_s7 = inlined_call_operand.hbm [shape: f32[8,128], index: 7, kind: output, shape index: {}]  }
   0x1   :  { %13 = vsyncpa [#allocation6], 0 }
   0x2   :  { %14 = vsyncpa [#allocation9], 0 }
   0x3   :  { %15 = vsyncpa [#allocation4], 0  ;;  %s758_s24 = smov [#allocation5]   ;;  %s640_s28 = scalar_lea.hbm %s881_s1, 1024 }
   0x4   :  { %s31_s25 = sshll.u32 %s758_s24, 4  ;;  %p641_p0 = scmp.ne.s32.totalorder %s881_s1, %s640_s28  ;;  %s32_s25 = int_to_ptr.vmem [resolvable:$true] %s31_s25 }
   0x5   :  { %p644_p1 = scmp.lt.u32.totalorder %s640_s28, %s881_s1 }
   0x7   :  { %p646_p2 = pnand %p644_p1, %p641_p0 }
   0x9   :  { %649 = shalt.err (!%p646_p2)
}
   0xa   :  { %s650_s10 = scalar_lea.vmem %s32_s25, 1024  ;;  %p655_p4 = scmp.lt.s32.totalorder %s32_s25, %s32_s25 }
   0xb   :  { %p651_p3 = scmp.ne.s32.totalorder %s32_s25, %s650_s10  ;;  %p656_p5 = scmp.lt.s32.totalorder %s650_s10, %s650_s10 }
   0xd   :  { %p657_p6 = por %p656_p5, %p655_p4 }
   0xf   :  { %p658_p7 = pnand %p657_p6, %p651_p3 }
  0x11   :  { %661 = shalt.err (!%p658_p7)
}
  0x12   :  { %s759_s11 = smov 128   ;;  %s760_s12 = smov 8  }
  0x13   :  { %37 = dma.hbm_to_vmem [thread:$0]  %s881_s1, 1024, %s32_s25, [#allocation6], %s759_s11, %s759_s11, %s760_s12  }
  0x14   :  { %s761_s15 = smov [#allocation2]   ;;  %s762_s17 = smov [#allocation7]  }
  0x15   :  { %s22_s16 = sshll.u32 %s761_s15, 4  ;;  %s45_s18 = sshll.u32 %s762_s17, 4  ;;  %s23_s16 = int_to_ptr.vmem [resolvable:$true] %s22_s16  ;;  %s46_s18 = int_to_ptr.vmem [resolvable:$true] %s45_s18 }
  0x16   :  { %s662_s21 = scalar_lea.hbm %s880_s0, 64 }
  0x17   :  { %p663_p8 = scmp.ne.s32.totalorder %s880_s0, %s662_s21  ;;  %p666_p9 = scmp.lt.u32.totalorder %s662_s21, %s880_s0 }
  0x19   :  { %p668_p10 = pnand %p666_p9, %p663_p8 }
  0x1b   :  { %671 = shalt.err (!%p668_p10)
}
  0x1c   :  { %s672_s1 = scalar_lea.vmem %s23_s16, 64  ;;  %p677_p12 = scmp.lt.s32.totalorder %s23_s16, %s23_s16 }
  0x1d   :  { %p673_p11 = scmp.ne.s32.totalorder %s23_s16, %s672_s1  ;;  %p678_p13 = scmp.lt.s32.totalorder %s672_s1, %s672_s1 }
  0x1f   :  { %p679_p0 = por %p678_p13, %p677_p12 }
  0x21   :  { %p680_p1 = pnand %p679_p0, %p673_p11 }
  0x23   :  { %683 = shalt.err (!%p680_p1)
}
  0x24   :  { %25 = dma.hbm_to_vmem [thread:$0]  %s880_s0, 64, %s23_s16, [#allocation3]  }
  0x25   :  { %s684_s30 = scalar_lea.hbm %s883_s3, 2048 }
  0x26   :  { %p685_p2 = scmp.ne.s32.totalorder %s883_s3, %s684_s30  ;;  %p688_p3 = scmp.lt.u32.totalorder %s684_s30, %s883_s3 }
  0x28   :  { %p690_p4 = pnand %p688_p3, %p685_p2 }
  0x2a   :  { %693 = shalt.err (!%p690_p4)
}
  0x2b   :  { %s694_s12 = scalar_lea.vmem %s46_s18, 2048  ;;  %p699_p6 = scmp.lt.s32.totalorder %s46_s18, %s46_s18 }
  0x2c   :  { %p695_p5 = scmp.ne.s32.totalorder %s46_s18, %s694_s12  ;;  %p700_p7 = scmp.lt.s32.totalorder %s694_s12, %s694_s12 }
  0x2e   :  { %p701_p8 = por %p700_p7, %p699_p6 }
  0x30   :  { %p702_p9 = pnand %p701_p8, %p695_p5 }
  0x32   :  { %705 = shalt.err (!%p702_p9)
}
  0x33   :  { %s763_s0 = smov 64   ;;  %s764_s13 = smov 4  }
  0x34   :  { %51 = dma.hbm_to_vmem [thread:$0]  %s883_s3, 2048, %s46_s18, [#allocation6], %s763_s0, %s763_s0, %s764_s13  }
  0x35   :  { %s765_s16 = smov [#allocation8]   ;;  %s706_s21 = scalar_lea.hbm %s885_s5, 1024 }
  0x36   :  { %s59_s17 = sshll.u32 %s765_s16, 4  ;;  %p707_p10 = scmp.ne.s32.totalorder %s885_s5, %s706_s21  ;;  %s60_s17 = int_to_ptr.vmem [resolvable:$true] %s59_s17 }
  0x37   :  { %p710_p11 = scmp.lt.u32.totalorder %s706_s21, %s885_s5 }
  0x39   :  { %p712_p12 = pnand %p710_p11, %p707_p10 }
  0x3b   :  { %715 = shalt.err (!%p712_p12)
}
  0x3c   :  { %s716_s1 = scalar_lea.vmem %s60_s17, 1024  ;;  %p721_p0 = scmp.lt.s32.totalorder %s60_s17, %s60_s17 }
  0x3d   :  { %p717_p13 = scmp.ne.s32.totalorder %s60_s17, %s716_s1  ;;  %p722_p1 = scmp.lt.s32.totalorder %s716_s1, %s716_s1 }
  0x3f   :  { %p723_p2 = por %p722_p1, %p721_p0 }
  0x41   :  { %p724_p3 = pnand %p723_p2, %p717_p13 }
  0x43   :  { %727 = shalt.err (!%p724_p3)
}
  0x44   :  { %65 = dma.hbm_to_vmem [thread:$0]  %s885_s5, 1024, %s60_s17, [#allocation9], %s763_s0, %s763_s0, %s764_s13  }
  0x45   :  { %750 = dma.done.wait [#allocation3], 64  }
  0x46   :  { %751 = vsyncadd [#allocation3], 4294967232 }
  0x47   :  { %752 = dma.done.wait [#allocation6], 3072  }
  0x48   :  { %753 = vsyncadd [#allocation6], 4294964224 }
  0x49   :  { %754 = dma.done.wait [#allocation9], 1024  }
  0x4a   :  { %755 = vsyncadd [#allocation9], 4294966272  ;;  %v766_v0 = vmov 0   ;;  %vm144_vm0 = vcmask 1044480   ;;  %v604_v1 = vld [vmem:[#allocation5 + $0x4] ss:$8 sps:$4 sm:$0xff]   ;;  %v92_v38 = vlaneseq }
  0x4b   :  { %186 = vmatprep.mubr.bf16.mxu0 %v766_v0  ;;  %vm145_vm1 = vcmask 1045504   ;;  %v767_v2 = vmov 65535   ;;  %v606_v4 = vld [vmem:[#allocation5] ss:$8 sps:$4 sm:$0xff]   ;;  %154 = vmatprep.subr.bf16.mxu0 %v604_v1  ;;  %v607_v5 = vld [vmem:[#allocation5 + $0x14] ss:$8 sps:$4 sm:$0xff]  }
  0x4c   :  { %v146_v3 = vsel %vm144_vm0, 4294967295, %v767_v2  ;;  %155 = vmatpush1.bf16.msra.mxu0 %v606_v4  ;;  %v609_v6 = vld [vmem:[#allocation5 + $0x10] ss:$8 sps:$4 sm:$0xff]   ;;  %v610_v7 = vld [vmem:[#allocation5 + $0x24] ss:$8 sps:$4 sm:$0xff]   ;;  %vm140_vm2 = vcmask 482304  }
  0x4d   :  { %v147_v8 = vsel %vm145_vm1, %v146_v3, 0  ;;  %156 = vmatprep.subr.bf16.mxu0 %v607_v5  ;;  %v613_v9 = vld [vmem:[#allocation5 + $0x34] ss:$8 sps:$4 sm:$0x3f]   ;;  %v612_v10 = vld [vmem:[#allocation5 + $0x20] ss:$8 sps:$4 sm:$0xff]  }
  0x4e   :  { %v615_v11 = vld [vmem:[#allocation5 + $0x30] ss:$8 sps:$4 sm:$0x3f]   ;;  %v616_v12 = vld [vmem:[#allocation7 + $0x40] sm:$0xff]   ;;  %v152_v14 = vand.u32 %v613_v9, %v147_v8  ;;  %v618_v15 = vld [vmem:[#allocation7 + $0x48] sm:$0xff]   ;;  %v768_v32 = vmov 0.0  }
  0x4f   :  { %540 = vmatprep.subr.bf16.mxu1 %v616_v12  ;;  %v617_v13 = vld [vmem:[#allocation7] sm:$0xff]   ;;  %v619_v16 = vld [vmem:[#allocation7 + $0x8] sm:$0xff]   ;;  %v620_v17 = vld [vmem:[#allocation7 + $0x50] sm:$0xff]   ;;  %v149_v18 = vand.u32 %v615_v11, %v147_v8  ;;  %v93_v39 = vshrl.u32 %v92_v38, 7  ;;  %vm769_vm3 = vmmov 0   ;;  %s770_s30 = smov [#allocation10]  }
  0x50   :  { %157 = vmatpush1.bf16.msra.mxu0 %v609_v6  ;;  %541 = vmatpush3.bf16.msra.mxu1 %v617_v13  ;;  %v621_v19 = vld [vmem:[#allocation7 + $0x10] sm:$0xff]   ;;  %v622_v20 = vld [vmem:[#allocation7 + $0x58] sm:$0xff]   ;;  %v624_v23 = vld [vmem:[#allocation7 + $0x60] sm:$0xff]   ;;  %s494_s8 = sshll.u32 %s770_s30, 4  ;;  %s495_s8 = int_to_ptr.vmem [resolvable:$true] %s494_s8 }
  0x51   :  { %158 = vmatprep.subr.bf16.mxu0 %v610_v7  ;;  %542 = vmatprep.subr.bf16.mxu1 %v618_v15  ;;  %v81_v21 = vld [vmem:[#allocation2] sm:$0xf]  ;;  %v625_v24 = vld [vmem:[#allocation7 + $0x20] sm:$0xff]   ;;  %v626_v25 = vld [vmem:[#allocation7 + $0x68] sm:$0xff]   ;;  %v94_v40 = vsub.s32 0, %v93_v39  ;;  %v98_v42 = vsub.s32 1, %v93_v39  ;;  %p733_p5 = scmp.lt.s32.totalorder %s495_s8, %s495_s8 }
  0x52   :  { %v623_v22 = vld [vmem:[#allocation7 + $0x18] sm:$0xff]   ;;  %v627_v26 = vld [vmem:[#allocation7 + $0x28] sm:$0xff]   ;;  %v628_v27 = vld [vmem:[#allocation7 + $0x70] sm:$0xff]  }
  0x53   :  { %v629_v28 = vld [vmem:[#allocation7 + $0x30] sm:$0xff]   ;;  %v630_v29 = vld [vmem:[#allocation7 + $0x78] sm:$0xff]   ;;  %v632_v31 = vld [vmem:[#allocation8] sm:$0xff]  }
  0x54   :  { %159 = vmatpush1.bf16.msra.mxu0 %v612_v10  ;;  %543 = vmatpush3.bf16.msra.mxu1 %v619_v16  ;;  %v631_v30 = vld [vmem:[#allocation7 + $0x38] sm:$0xff]   ;;  %v633_v33 = vld [vmem:[#allocation8 + $0x8] sm:$0xff]   ;;  %v634_v34 = vld [vmem:[#allocation8 + $0x10] sm:$0xff]  }
  0x55   :  { %160 = vmatprep.subr.bf16.mxu0 %v152_v14  ;;  %544 = vmatprep.subr.bf16.mxu1 %v620_v17  ;;  %v635_v35 = vld [vmem:[#allocation8 + $0x18] sm:$0xff]   ;;  %v636_v36 = vld [vmem:[#allocation8 + $0x20] sm:$0xff]   ;;  %v637_v37 = vld [vmem:[#allocation8 + $0x28] sm:$0xff]  }
  0x56   :  { %v90_v41 = vld [vmem:[%s882_s2] sm:$0x3]  ;;  %v638_v55 = vld [vmem:[#allocation8 + $0x30] sm:$0xff]  }
  0x57   :  { %v95_v43 = vrot.slane %v90_v41, %v94_v40  ;;  %v99_v44 = vrot.slane %v90_v41, %v98_v42  ;;  %v639_v56 = vld [vmem:[#allocation8 + $0x38] sm:$0xff]  }
  0x58   :  { %161 = vmatpush1.bf16.msra.mxu0 %v149_v18  ;;  %545 = vmatpush3.bf16.msra.mxu1 %v621_v19  ;;  %v514_v58 = vld [vmem:[%s884_s4] ss:$0 sm:$0xff]  ;;  %s728_s4 = scalar_lea.vmem %s495_s8, 128 }
  0x59   :  { %546 = vmatprep.subr.bf16.mxu1 %v622_v20  ;;  %571 = vmatprep.subr.bf16.mxu0 %v768_v32  ;;  %v531_v2 = vld [vmem:[%s886_s6] ss:$0 sm:$0xff]  ;;  %p729_p4 = scmp.ne.s32.totalorder %s495_s8, %s728_s4  ;;  %p734_p6 = scmp.lt.s32.totalorder %s728_s4, %s728_s4 }
  0x5b   :  { %513 = vmatmul.mubr.msk.bf16.vlgmr.msra.gmra.mrb[0].mxu0 %vm140_vm2, %v81_v21  ;;  %p735_p7 = por %p734_p6, %p733_p5 }
  0x5c   :  { %547 = vmatpush3.bf16.msra.mxu1 %v623_v22  ;;  %572 = vmatpush3.bf16.msra.mxu0 %v632_v31 }
  0x5d   :  { %548 = vmatprep.subr.bf16.mxu1 %v624_v23  ;;  %573 = vmatprep.subr.bf16.mxu0 %v768_v32  ;;  %p736_p8 = pnand %p735_p7, %p729_p4 }
  0x5e   :  { %587 = vmatprep.mubr.msk.bf16.mxu0 %vm769_vm3, %v768_v32 }
  0x60   :  { %549 = vmatpush3.bf16.msra.mxu1 %v625_v24  ;;  %574 = vmatpush3.bf16.msra.mxu0 %v633_v33 }
  0x61   :  { %550 = vmatprep.subr.bf16.mxu1 %v626_v25  ;;  %575 = vmatprep.subr.bf16.mxu0 %v768_v32 }
  0x64   :  { %551 = vmatpush3.bf16.msra.mxu1 %v627_v26  ;;  %576 = vmatpush3.bf16.msra.mxu0 %v634_v34 }
  0x65   :  { %552 = vmatprep.subr.bf16.mxu1 %v628_v27  ;;  %577 = vmatprep.subr.bf16.mxu0 %v768_v32 }
  0x68   :  { %553 = vmatpush3.bf16.msra.mxu1 %v629_v28  ;;  %578 = vmatpush3.bf16.msra.mxu0 %v635_v35 }
  0x69   :  { %554 = vmatprep.subr.bf16.mxu1 %v630_v29  ;;  %579 = vmatprep.subr.bf16.mxu0 %v768_v32 }
  0x6c   :  { %555 = vmatpush3.bf16.msra.mxu1 %v631_v30  ;;  %580 = vmatpush3.bf16.msra.mxu0 %v636_v36 }
  0x6d   :  { %581 = vmatprep.subr.bf16.mxu0 %v768_v32 }
  0x70   :  { %582 = vmatpush3.bf16.msra.mxu0 %v637_v37 }
  0x71   :  { %583 = vmatprep.subr.bf16.mxu0 %v768_v32 }
  0x74   :  { %584 = vmatpush3.bf16.msra.mxu0 %v638_v55 }
  0x75   :  { %585 = vmatprep.subr.bf16.mxu0 %v768_v32 }
  0x78   :  { %586 = vmatpush3.bf16.msra.mxu0 %v639_v56 }
 0x12e   :  { %v188_v45 = vpop.f32.mrb[0].mxu0 }
 0x12f   :  { %v189_v46 = vadd.f32 %v188_v45, %v95_v43  ;;  %v190_v47 = vpop.f32.mrb[1].mxu0 }
 0x130   :  { %v191_v48 = vadd.f32 %v190_v47, %v99_v44  ;;  %v192_v49 = vpop.f32.mrb[2].mxu0 }
 0x131   :  { %v195_v50 = vmax.f32 %v189_v46, 0.0  ;;  %v193_v51 = vpop.f32.mrb[3].mxu0 }
 0x132   :  { %v196_v52 = vmax.f32 %v191_v48, 0.0 }
 0x133   :  { %v197_v54 = vpack.c.bf16 %v195_v50, %v195_v50 }
 0x134   :  { %v198_v53 = vpack.c.bf16 %v196_v52, %v196_v52 }
 0x136   :  { %366 = vmatprep.mubr.bf16.mxu1 %v198_v53 }
 0x137   :  { %367 = vmatmul.mubr.bf16.vlgmr.msra.gmra.mrb[0].mxu1 %v197_v54 }
 0x20a   :  { %v556_v57 = vpop.f32.mrb[0].mxu1 }
 0x20b   :  { %v557_v59 = vpop.f32.mrb[1].mxu1 }
 0x20c   :  { %v558_v60 = vadd.f32 %v557_v59, %v556_v57  ;;  %v559_v61 = vpop.f32.mrb[2].mxu1 }
 0x20d   :  { %v560_v62 = vpop.f32.mrb[3].mxu1 }
 0x20e   :  { %v369_v63 = vadd.f32 %v558_v60, %v514_v58 }
 0x210   :  { %v374_v0 = vmax.f32 %v369_v63, 0.0 }
 0x212   :  { %v375_v1 = vpack.c.bf16 %v374_v0, %v374_v0 }
 0x214   :  { %588 = vmatmul.mubr.bf16.vlgmr.msra.gmra.mrb[4].mxu0 %v375_v1 }
 0x2e7   :  { %v481_v3 = vpop.f32.mrb[4].mxu0 }
 0x2e8   :  { %v482_v4 = vadd.f32 %v531_v2, %v481_v3  ;;  %v589_v5 = vpop.f32.mrb[5].mxu0 }
 0x2e9   :  { %v484_v6 = vpop.f32.mrb[6].mxu0 }
 0x2ea   :  { %487 = vst [vmem:[#allocation10] sm:$0xff] %v482_v4  ;;  %v590_v7 = vpop.f32.mrb[7].mxu0 }
 0x2eb   :  { %739 = shalt.err (!%p736_p8)
}
 0x2ec   :  { %s740_s6 = scalar_lea.hbm %s887_s7, 128 }
 0x2ed   :  { %p741_p9 = scmp.ne.s32.totalorder %s887_s7, %s740_s6  ;;  %p744_p10 = scmp.lt.u32.totalorder %s740_s6, %s887_s7 }
 0x2ef   :  { %p746_p11 = pnand %p744_p10, %p741_p9 }
 0x2f1   :  { %749 = shalt.err (!%p746_p11)
}
 0x2f2   :  { %497 = dma.vmem_to_hbm [thread:$0]  %s495_s8, 128, %s887_s7, [#allocation4]  }
 0x2f3   :  { %756 = dma.done.wait [#allocation4], 128  }
 0x2f4   :  { %757 = vsyncadd [#allocation4], 4294967168 }
 0x2f5   :  { %501 = vsyncpa [#allocation3], 1 }
 0x2f6   :  { %502 = vsyncpa [#allocation6], 1 }
 0x2f7   :  { %503 = vsyncpa [#allocation9], 1 }
 0x2f8   :  { %504 = vsyncpa [#allocation4], 1 }

</bundles_post_ra>
